<compile_context>
chip_gen: v5e
topology: v5e:2x2
jax: 0.10.0
libtpu: 0.0.40
codegen_flags: <defaults>
</compile_context>

<pallas_src>
import functools

import jax
import jax.numpy as jnp
from jax import lax
from jax.experimental import pallas as pl
from jax.experimental.pallas import tpu as pltpu


def _round_up(x: int, m: int) -> int:
    return ((x + m - 1) // m) * m


@functools.lru_cache(maxsize=1)
def _vmem_budget_bytes() -> int:
    """~80% of this generation's physical VMEM (v5e/v6e: 128 MiB, v7x: 64 MiB)."""
    cap = 64 * 1024 * 1024  # conservative fallback (v7x-sized)
    try:
        info_fn = getattr(pltpu, "get_tpu_info", None)
        if info_fn is not None:
            cap = int(getattr(info_fn(), "vmem_capacity_bytes", cap))
    except Exception:
        pass
    return max(32 * 1024 * 1024, min(int(cap * 0.8), 112 * 1024 * 1024))


def _tile_caps(vmem_budget: int):
    if vmem_budget >= 80 * 1024 * 1024:   # v5e / v6e (128 MiB physical VMEM)
        return 1024, 1024, 2048
    return 512, 512, 1024                  # v7x (64 MiB physical VMEM) / fallback


def _pick_tile(dim: int, align: int, cap: int):
    """Return (tile, padded_dim).

    tile is a multiple of `align`, <= cap, and divides padded_dim exactly;
    padded_dim is dim rounded up to `align` plus at most ~12.5% extra (only
    when no reasonably-sized exact divisor exists).
    """
    aligned = _round_up(dim, align)
    cap = max(align, (cap // align) * align)
    if aligned <= cap:
        return aligned, aligned
    # Largest exact divisor of the aligned dim that is a multiple of `align`.
    best_exact = align
    for t in range(align, cap + 1, align):
        if aligned % t == 0:
            best_exact = t
    if best_exact * 2 >= cap:
        return best_exact, aligned
    # Exact divisors are all small; allow limited padding for a bigger tile.
    budget = aligned + max(align, aligned // 8)
    tile, padded = best_exact, aligned
    for t in range(align, cap + 1, align):
        p = _round_up(aligned, t)
        if p <= budget and t > tile:
            tile, padded = t, p
    return tile, padded


# ---------------------------------------------------------------------------
# Kernels. x tile: (tm, tk); weight tile (native layout): (tn, tk).
# Contraction over the shared K axis -> (tm, tn) on the MXU, f32 accumulation.
# ---------------------------------------------------------------------------
_DN = (((1,), (1,)), ((), ()))  # contract dim 1 of x with dim 1 of w


def _mm_kernel(x_ref, w_ref, o_ref, acc_ref):
    k = pl.program_id(2)

    @pl.when(k == 0)
    def _():
        acc_ref[...] = jnp.zeros_like(acc_ref)

    acc_ref[...] += lax.dot_general(
        x_ref[...], w_ref[...], dimension_numbers=_DN,
        preferred_element_type=jnp.float32)

    @pl.when(k == pl.num_programs(2) - 1)
    def _():
        o_ref[...] = acc_ref[...].astype(o_ref.dtype)


def _mm_kernel_bias(x_ref, w_ref, b_ref, o_ref, acc_ref):
    k = pl.program_id(2)

    @pl.when(k == 0)
    def _():
        acc_ref[...] = jnp.zeros_like(acc_ref)

    acc_ref[...] += lax.dot_general(
        x_ref[...], w_ref[...], dimension_numbers=_DN,
        preferred_element_type=jnp.float32)

    @pl.when(k == pl.num_programs(2) - 1)
    def _():
        # Bias added exactly once, in the epilogue.
        o_ref[...] = (acc_ref[...] + b_ref[...].astype(jnp.float32)).astype(o_ref.dtype)


def _mm_kernel_1k(x_ref, w_ref, o_ref):
    o_ref[...] = lax.dot_general(
        x_ref[...], w_ref[...], dimension_numbers=_DN,
        preferred_element_type=jnp.float32).astype(o_ref.dtype)


def _mm_kernel_1k_bias(x_ref, w_ref, b_ref, o_ref):
    acc = lax.dot_general(
        x_ref[...], w_ref[...], dimension_numbers=_DN,
        preferred_element_type=jnp.float32)
    o_ref[...] = (acc + b_ref[...].astype(jnp.float32)).astype(o_ref.dtype)


# ---------------------------------------------------------------------------
# Tiled pallas_call driver (operates on padded 2-D operands).
# ---------------------------------------------------------------------------
def _tiled_linear(x2d, w, bias2d, *, tm, tn, tk):
    Mp, Kp = x2d.shape
    Np = w.shape[0]
    gm, gn, gk = Mp // tm, Np // tn, Kp // tk

    itemsize = jnp.dtype(x2d.dtype).itemsize
    cost = pl.CostEstimate(
        flops=2 * Mp * Np * Kp,
        transcendentals=0,
        # Actual traffic including re-reads of the streaming operands.
        bytes_accessed=itemsize * (Mp * Kp * gn + Np * Kp * gm + Mp * Np),
    )
    out_shape = jax.ShapeDtypeStruct((Mp, Np), x2d.dtype)
    semantics = ("parallel", "parallel") + (("arbitrary",) if gk > 1 else ())
    compiler_params = pltpu.CompilerParams(
        dimension_semantics=semantics,
        vmem_limit_bytes=_vmem_budget_bytes(),
    )

    if gk == 1:
        # K fits in one tile: no accumulator scratch, no K grid axis.
        x_spec = pl.BlockSpec((tm, tk), lambda i, j: (i, 0))
        w_spec = pl.BlockSpec((tn, tk), lambda i, j: (j, 0))
        o_spec = pl.BlockSpec((tm, tn), lambda i, j: (i, j))
        if bias2d is not None:
            b_spec = pl.BlockSpec((1, tn), lambda i, j: (0, j))
            return pl.pallas_call(
                _mm_kernel_1k_bias,
                out_shape=out_shape,
                grid_spec=pltpu.PrefetchScalarGridSpec(
                    num_scalar_prefetch=0, grid=(gm, gn),
                    in_specs=[x_spec, w_spec, b_spec], out_specs=o_spec),
                compiler_params=compiler_params, cost_estimate=cost,
            )(x2d, w, bias2d)
        return pl.pallas_call(
            _mm_kernel_1k,
            out_shape=out_shape,
            grid_spec=pltpu.PrefetchScalarGridSpec(
                num_scalar_prefetch=0, grid=(gm, gn),
                in_specs=[x_spec, w_spec], out_specs=o_spec),
            compiler_params=compiler_params, cost_estimate=cost,
        )(x2d, w)

    # Multi-step K reduction with an f32 VMEM accumulator.
    x_spec = pl.BlockSpec((tm, tk), lambda i, j, k: (i, k))
    w_spec = pl.BlockSpec((tn, tk), lambda i, j, k: (j, k))
    o_spec = pl.BlockSpec((tm, tn), lambda i, j, k: (i, j))
    scratch = [pltpu.VMEM((tm, tn), jnp.float32)]

    if bias2d is not None:
        b_spec = pl.BlockSpec((1, tn), lambda i, j, k: (0, j))
        return pl.pallas_call(
            _mm_kernel_bias,
            out_shape=out_shape,
            grid_spec=pltpu.PrefetchScalarGridSpec(
                num_scalar_prefetch=0, grid=(gm, gn, gk),
                in_specs=[x_spec, w_spec, b_spec], out_specs=o_spec,
                scratch_shapes=scratch),
            compiler_params=compiler_params, cost_estimate=cost,
        )(x2d, w, bias2d)
    return pl.pallas_call(
        _mm_kernel,
        out_shape=out_shape,
        grid_spec=pltpu.PrefetchScalarGridSpec(
            num_scalar_prefetch=0, grid=(gm, gn, gk),
            in_specs=[x_spec, w_spec], out_specs=o_spec,
            scratch_shapes=scratch),
        compiler_params=compiler_params, cost_estimate=cost,
    )(x2d, w)


@jax.jit
def normal_linear(x, weight, bias=None):
    """Pallas implementation of NormalLinear.forward.

    x:      (..., in_features)
    weight: (out_features, in_features)   (PyTorch F.linear layout, kept as-is)
    bias:   (out_features,) or None
    """
    *lead, K = x.shape
    N, Kw = weight.shape
    if Kw != K:
        raise ValueError(f"weight in_features {Kw} != x last dim {K}")
    M = 1
    for d in lead:
        M *= d
    x2d = x.reshape(M, K)

    itemsize = jnp.dtype(x.dtype).itemsize
    sub = {4: 8, 2: 16, 1: 32}.get(itemsize, 8)   # dtype-aware sublane rounding

    TM_MAX, TN_MAX, TK_MAX = _tile_caps(_vmem_budget_bytes())
    tm, Mp = _pick_tile(M, sub, TM_MAX)
    tn, Np = _pick_tile(N, 128, TN_MAX)
    tk, Kp = _pick_tile(K, 128, TK_MAX)

    # If the parallel (M, N) grid collapses to a single block, split one tile
    # so v7x's second TensorCore has work (harmless on single-TC v5e/v6e).
    if (Mp // tm) * (Np // tn) == 1:
        if tn % 256 == 0:
            tn //= 2
        elif tm % (2 * sub) == 0:
            tm //= 2

    # Pad only to alignment/tile-divisor, not to full tile-cap multiples.
    if (Mp, Kp) != (M, K):
        x2d = jnp.pad(x2d, ((0, Mp - M), (0, Kp - K)))
    # TODO(synk): in a real model, pad weight/bias once at parameter load time
    # instead of per call (no transpose is needed anymore — W stays (N, K)).
    w = weight
    if (Np, Kp) != (N, K):
        w = jnp.pad(w, ((0, Np - N), (0, Kp - K)))
    bias2d = None
    if bias is not None:
        b = bias if Np == N else jnp.pad(bias, (0, Np - N))
        bias2d = b.reshape(1, Np)

    y2d = _tiled_linear(x2d, w, bias2d, tm=tm, tn=tn, tk=tk)
    return y2d[:M, :N].reshape(*lead, N)


if __name__ == "__main__":
    key = jax.random.PRNGKey(0)
    kx, kw, kb, kx2, kw2, kb2 = jax.random.split(key, 6)

    # --- Small demo shapes implied by the module (single-K-step path) ------
    batch, seq, in_features, out_features = 2, 8, 32, 64
    x = jax.random.normal(kx, (batch, seq, in_features), dtype=jnp.float32)
    weight = jax.random.normal(kw, (out_features, in_features), jnp.float32) * 0.02
    bias = jax.random.normal(kb, (out_features,), jnp.float32) * 0.02

    y = normal_linear(x, weight, bias)
    y_nb = normal_linear(x, weight)
    jax.block_until_ready((y, y_nb))

    ref = jnp.einsum("bsk,nk->bsn", x, weight) + bias
    ref_nb = jnp.einsum("bsk,nk->bsn", x, weight)
    assert y.shape == (batch, seq, out_features)
    assert jnp.allclose(y, ref, atol=1e-5), "bias path mismatch"
    assert jnp.allclose(y_nb, ref_nb, atol=1e-5), "no-bias path mismatch"

    # --- Larger / ragged shapes: multi-K reduction + N padding -------------
    b2, s2, k2, n2 = 2, 100, 2560, 320   # M=200, K=2560 (multi K-step), N pads 320->384
    x2 = jax.random.normal(kx2, (b2, s2, k2), dtype=jnp.float32)
    w2 = jax.random.normal(kw2, (n2, k2), jnp.float32) * 0.02
    bb2 = jax.random.normal(kb2, (n2,), jnp.float32) * 0.02

    y2 = normal_linear(x2, w2, bb2)
    y2_nb = normal_linear(x2, w2)
    jax.block_until_ready((y2, y2_nb))

    ref2 = jnp.einsum("bsk,nk->bsn", x2, w2) + bb2
    ref2_nb = jnp.einsum("bsk,nk->bsn", x2, w2)
    assert jnp.allclose(y2, ref2, atol=2e-3, rtol=2e-3), "tiled bias path mismatch"
    assert jnp.allclose(y2_nb, ref2_nb, atol=2e-3, rtol=2e-3), "tiled no-bias path mismatch"

    print("KERNEL_OK")
</pallas_src>

<mosaic_0001>
module attributes {stable_mosaic.version = 11 : i64} {
  func.func @_mm_kernel_1k_bias(%arg0: i32, %arg1: i32, %arg2: memref<8x128xf32, #tpu.memory_space<vmem>>, %arg3: memref<128x128xf32, #tpu.memory_space<vmem>>, %arg4: memref<1x128xf32, #tpu.memory_space<vmem>>, %arg5: memref<8x128xf32, #tpu.memory_space<vmem>>) attributes {dimension_semantics = [#tpu.dimension_semantics<parallel>, #tpu.dimension_semantics<parallel>], iteration_bounds = array<i64: 2, 1>, scalar_prefetch = 0 : i64, scratch_operands = 0 : i64, tpu.core_type = #tpu.core_type<tc>, window_params = [{transform_indices = @transform_0, window_bounds = array<i64: 8, 128>}, {transform_indices = @transform_1, window_bounds = array<i64: 128, 128>}, {transform_indices = @transform_2, window_bounds = array<i64: 1, 128>}, {transform_indices = @transform_3, window_bounds = array<i64: 8, 128>}]} {
    %c0 = arith.constant 0 : index
    %c0_0 = arith.constant 0 : index
    %0 = vector.load %arg2[%c0, %c0_0] : memref<8x128xf32, #tpu.memory_space<vmem>>, vector<8x128xf32>
    %c0_1 = arith.constant 0 : index
    %c0_2 = arith.constant 0 : index
    %1 = vector.load %arg3[%c0_1, %c0_2] : memref<128x128xf32, #tpu.memory_space<vmem>>, vector<128x128xf32>
    %cst = arith.constant dense<0.000000e+00> : vector<8x128xf32>
    %2 = tpu.matmul %0, %1, %cst {dimension_numbers = #tpu.dot_dimension_numbers<[1], [1], [0], [0], [0, 0, 1, 0], [], []>} : vector<8x128xf32>, vector<128x128xf32>, vector<8x128xf32> -> vector<8x128xf32>
    %c0_3 = arith.constant 0 : index
    %c0_4 = arith.constant 0 : index
    %3 = vector.load %arg4[%c0_3, %c0_4] : memref<1x128xf32, #tpu.memory_space<vmem>>, vector<1x128xf32>
    %4 = vector.broadcast %3 : vector<1x128xf32> to vector<8x128xf32>
    %5 = arith.addf %2, %4 : vector<8x128xf32>
    %c0_5 = arith.constant 0 : index
    %c0_6 = arith.constant 0 : index
    %6 = vector.load %arg5[%c0_5, %c0_6] : memref<8x128xf32, #tpu.memory_space<vmem>>, vector<8x128xf32>
    tpu.vector_store %arg5[%c0_5, %c0_6], %5 {strides = array<i32>} : memref<8x128xf32, #tpu.memory_space<vmem>>, vector<8x128xf32>,
    return
  }
  func.func @transform_0(%arg0: i32, %arg1: i32) -> (i32, i32) {
    %c0_i32 = arith.constant 0 : i32
    %c0_i32_0 = arith.constant 0 : i32
    return %arg0, %c0_i32 : i32, i32
  }
  func.func @transform_1(%arg0: i32, %arg1: i32) -> (i32, i32) {
    %c0_i32 = arith.constant 0 : i32
    %c0_i32_0 = arith.constant 0 : i32
    return %arg1, %c0_i32 : i32, i32
  }
  func.func @transform_2(%arg0: i32, %arg1: i32) -> (i32, i32) {
    %c0_i32 = arith.constant 0 : i32
    %c0_i32_0 = arith.constant 0 : i32
    return %c0_i32, %arg1 : i32, i32
  }
  func.func @transform_3(%arg0: i32, %arg1: i32) -> (i32, i32) {
    %c0_i32 = arith.constant 0 : i32
    return %arg0, %arg1 : i32, i32
  }
}

</mosaic_0001>

<bundles_post_ra>
// kernel: normal_linear.1
= control target key start
LH: loop header
LB: loop body
LE: loop exit
PB: predicated region body
PF: predicated region fallthrough
CT: control target
= control target key end

     0   :  { %s443_s12 = smov 0   ;;  %s445_s13 = smov 0   ;;  %s531_s0 = inlined_call_operand.vmem [shape: f32[16,128], index: 0, kind: input, shape index: {}]   ;;  %s532_s1 = inlined_call_operand.vmem [shape: f32[128,128], index: 1, kind: input, shape index: {}]   ;;  %s533_s2 = inlined_call_operand.vmem [shape: f32[1,128], index: 2, kind: input, shape index: {}]   ;;  %s534_s3 = inlined_call_operand.vmem [shape: f32[16,128], index: 3, kind: output, shape index: {}]  }
   0x1   :  { %s447_s14 = smov 0  }
   0x2 LB: > { %s25_s15 = sadd.s32 1, %s417_s13  ;;  %p369_p0 = scmp.ge.s32.totalorder %s421_s14, 1  ;;  %s421_s14 = sphi %s447_s14, %s13_s14   ;;  %s417_s13 = sphi %s445_s13, %s536_s13   ;;  %s413_s12 = sphi %s443_s12, %s535_s12  }
   0x3   : > { %p27_p1 = scmp.ge.s32.totalorder %s25_s15, 2  ;;  %p169_p2 = scmp.lt.s32.totalorder %s421_s14, 3 }
   0x5   : > { %s538_s15 = smov (%p27_p1, %s25_s15), 0  ;;  %p170_p3 = pnand %p369_p0, %p169_p2 }
   0x6   : > { %p202_p4 = scmp.lt.s32.totalorder (!%p170_p3), %s413_s12, 1 }
   0x7   : > { %173 = sbr.rel (%p170_p3) target bundleno = 205 (0xcd), region = 32 }
   0xc   : > { %v238_v0 = vld [vmem:[%s532_s1 + $0x78] sm:$0xff]  ;;  %v237_v1 = vld [vmem:[%s532_s1 + $0x70] sm:$0xff]  ;;  %v236_v2 = vld [vmem:[%s532_s1 + $0x68] sm:$0xff]  ;;  %s540_s12 = smov (!%p202_p4, %s413_s12), 1 }
   0xd   : > { %243 = vmatpush.xpose.msra.mxu0 %v238_v0  ;;  %v235_v3 = vld [vmem:[%s532_s1 + $0x60] sm:$0xff]  ;;  %v234_v4 = vld [vmem:[%s532_s1 + $0x58] sm:$0xff]  ;;  %v233_v5 = vld [vmem:[%s532_s1 + $0x50] sm:$0xff]  ;;  %s370_s23 = sshll.u32 %s540_s12, 3 }
   0xe   : > { %v232_v6 = vld [vmem:[%s532_s1 + $0x48] sm:$0xff]  ;;  %v231_v7 = vld [vmem:[%s532_s1 + $0x40] sm:$0xff]  ;;  %v230_v8 = vld [vmem:[%s532_s1 + $0x38] sm:$0xff]  ;;  %s205_s28 = scalar_lea.vmem %s531_s0, %s370_s23  ;;  %s221_s12 = scalar_lea.vmem %s534_s3, %s370_s23 }
   0xf   : > { %v229_v9 = vld [vmem:[%s532_s1 + $0x30] sm:$0xff]  ;;  %v228_v10 = vld [vmem:[%s532_s1 + $0x28] sm:$0xff]  ;;  %v227_v11 = vld [vmem:[%s532_s1 + $0x20] sm:$0xff] }
  0x10   : > { %v226_v12 = vld [vmem:[%s532_s1 + $0x18] sm:$0xff]  ;;  %v225_v13 = vld [vmem:[%s532_s1 + $0x10] sm:$0xff]  ;;  %v224_v14 = vld [vmem:[%s532_s1 + $0x8] sm:$0xff] }
  0x11   : > { %244 = vmatpush.xpose.msra.mxu0 %v237_v1  ;;  %v223_v15 = vld [vmem:[%s532_s1] sm:$0xff] }
  0x12   : > { %v222_v16 = vld [vmem:[%s205_s28] sm:$0xff] }
  0x13   : > { %v398_v17 = vld [vmem:[%s533_s2] ss:$0 sm:$0xff] }
  0x15   : > { %245 = vmatpush.xpose.msra.mxu0 %v236_v2 }
  0x19   : > { %246 = vmatpush.xpose.msra.mxu0 %v235_v3 }
  0x1d   : > { %247 = vmatpush.xpose.msra.mxu0 %v234_v4 }
  0x21   : > { %248 = vmatpush.xpose.msra.mxu0 %v233_v5 }
  0x25   : > { %249 = vmatpush.xpose.msra.mxu0 %v232_v6 }
  0x29   : > { %250 = vmatpush.xpose.msra.mxu0 %v231_v7 }
  0x2d   : > { %251 = vmatpush.xpose.msra.mxu0 %v230_v8 }
  0x31   : > { %252 = vmatpush.xpose.msra.mxu0 %v229_v9 }
  0x35   : > { %253 = vmatpush.xpose.msra.mxu0 %v228_v10 }
  0x39   : > { %254 = vmatpush.xpose.msra.mxu0 %v227_v11 }
  0x3d   : > { %255 = vmatpush.xpose.msra.mxu0 %v226_v12 }
  0x41   : > { %256 = vmatpush.xpose.msra.mxu0 %v225_v13 }
  0x45   : > { %257 = vmatpush.xpose.msra.mxu0 %v224_v14 }
  0x49   : > { %258 = vmatpush.xpose.msra.mxu0 %v223_v15 }
  0x4c   : > { %259 = vmatmul.f32.vlgmr.msra.gmra.mxu0 %v222_v16 }
  0xc9   : > { %v260_v18 = vpop.f32.mrf.mxu0 }
  0xca   : > { %v261_v19 = vadd.f32 %v398_v17, %v260_v18 }
  0xcc   : > { %263 = vst [vmem:[%s221_s12] sm:$0xff] %v261_v19 }
  0xcd PF: > { %s13_s14 = sadd.s32 1, %s421_s14   ;;  %s535_s12 = smov %s417_s13 }
  0xce   : > { %p10_p5 = scmp.ge.s32.totalorder %s13_s14, 4   ;;  %s536_s13 = smov %s538_s15 }
  0xd0   :  { %12 = sbr.rel (!%p10_p5) target bundleno = 2 (0x2), region = 68 }

</bundles_post_ra>
